<compile_context>
chip_gen: v7x
topology: tpu7x:2x2x1
jax: 0.10.0
libtpu: 0.0.40
codegen_flags: <defaults>
</compile_context>

<pallas_src>
import functools

import jax
import jax.numpy as jnp
from jax.experimental import pallas as pl
from jax.experimental.pallas import tpu as pltpu

EPS = 1e-6


# ---------------------------------------------------------------------------
# Kernels
# ---------------------------------------------------------------------------
def _vn_leaky_relu_kernel_full(x_ref, w_ref, o_ref, *, negative_slope):
    """Whole-batch kernel. x_ref/o_ref: [C, 3N] lane-dense; w_ref: [C, C]."""
    c, three_n = x_ref.shape
    n = three_n // 3

    # One fused MXU matmul over the whole lane-dense slab:
    #   d[c, v*N + n] = sum_{c'} W[c, c'] * x[c', v*N + n]
    d = jnp.dot(
        w_ref[...].astype(jnp.float32),
        x_ref[...].astype(jnp.float32),
        preferred_element_type=jnp.float32,
    )  # [C, 3N]

    # <x, d> and |d|^2 over the vector axis == sum of the three lane thirds.
    # x is re-sliced from the ref at each use instead of being held live.
    dotp = jnp.zeros((c, n), jnp.float32)
    dnsq = jnp.zeros((c, n), jnp.float32)
    for j in range(3):
        sl = slice(j * n, (j + 1) * n)
        xj = x_ref[:, sl].astype(jnp.float32)
        dj = d[:, sl]
        dotp = dotp + xj * dj
        dnsq = dnsq + dj * dj

    coef = (1.0 - negative_slope) * jnp.where(
        dotp < 0.0, dotp / (dnsq + EPS), 0.0
    )  # [C, N]

    # out = x - coef * d, stored third-by-third as lane-dense [C, N] slabs.
    for j in range(3):
        sl = slice(j * n, (j + 1) * n)
        o_ref[:, sl] = (
            x_ref[:, sl].astype(jnp.float32) - coef * d[:, sl]
        ).astype(o_ref.dtype)


def _vn_leaky_relu_kernel_tiled(x0_ref, x1_ref, x2_ref, w_ref, o_ref, acc_ref,
                                *, negative_slope):
    """N-tiled kernel, grid (B, N//tn, 3).

    x{0,1,2}_ref: lane-dense [C, tn] views of the three vector components of the
    current (batch, sample-window); w_ref: [C, C]; o_ref: [C, tn] = output plane v
    of this window; acc_ref: VMEM scratch [3, C, tn] f32 holding the three planes.
    """
    v = pl.program_id(2)

    @pl.when(v == 0)
    def _():
        # Shared per-window math runs once (first v step of the window); the other
        # two steps only stream the remaining planes out (the op is DMA-bound).
        w = w_ref[...].astype(jnp.float32)
        x0 = x0_ref[...].astype(jnp.float32)
        x1 = x1_ref[...].astype(jnp.float32)
        x2 = x2_ref[...].astype(jnp.float32)
        # Per-component [C,C] @ [C,tn] MXU matmuls keep every operand/result a
        # lane-dense [C, tn] slab (no in-VMEM concat/relayout); the MXU is far
        # from the bottleneck of this memory-bound op.
        d0 = jnp.dot(w, x0, preferred_element_type=jnp.float32)
        d1 = jnp.dot(w, x1, preferred_element_type=jnp.float32)
        d2 = jnp.dot(w, x2, preferred_element_type=jnp.float32)
        dotp = x0 * d0 + x1 * d1 + x2 * d2
        dnsq = d0 * d0 + d1 * d1 + d2 * d2
        coef = (1.0 - negative_slope) * jnp.where(
            dotp < 0.0, dotp / (dnsq + EPS), 0.0
        )
        acc_ref[0] = x0 - coef * d0
        acc_ref[1] = x1 - coef * d1
        acc_ref[2] = x2 - coef * d2

    # Lane-dense [C, tn] output block for vector component v of this window.
    o_ref[...] = acc_ref[v].astype(o_ref.dtype)


# ---------------------------------------------------------------------------
# Wrapper
# ---------------------------------------------------------------------------
def vn_leaky_relu(x, w, negative_slope=0.2, *, lane_tile=None,
                  vmem_budget_bytes=24 << 20):
    """VNLeakyReLU forward.

    x: [B, C, 3, N] (f32/bf16), w: [C, C] = nn.Linear(C, C, bias=False).weight.
    Returns an array with the same shape and dtype as x.
    """
    B, C, V, N = x.shape
    if V != 3:
        raise ValueError(f"expected a size-3 vector axis, got {V}")
    if w.shape != (C, C):
        # TODO(synk): share_nonlinearity=True uses nn.Linear(C, 1); only the default
        # square map_to_dir (share_nonlinearity=False) is implemented here.
        raise NotImplementedError("only share_nonlinearity=False (w: [C, C]) supported")

    # Pure metadata reshape: [B, C, 3, N] -> [B, C, 3N]; C lands on sublanes and
    # the samples on lanes (no 3->8 sublane padding of the vector axis).
    xf = x.reshape(B, C, 3 * N)
    isz = jnp.dtype(x.dtype).itemsize

    def _untiled_vmem_bytes(n):
        io = 2 * 2 * (C * 3 * n * isz)      # double-buffered input + output blocks
        tmp = 4 * (C * 3 * n) * 4           # d + f32 temporaries
        return io + tmp

    def _tiled_vmem_bytes(t):
        io = 2 * 4 * (C * t * isz)          # double-buffered 3 input views + output
        scratch = 3 * C * t * 4             # [3, C, tn] f32 accumulator
        tmp = 10 * (C * t) * 4              # d0..d2, dotp, dnsq, coef, ...
        return io + scratch + tmp

    # Auto-select N tiling when a whole-batch block would not fit comfortably.
    if (lane_tile is None and N % 128 == 0
            and _untiled_vmem_bytes(N) > vmem_budget_bytes):
        cands = [t for t in range(128, N + 1, 128) if N % t == 0]
        fits = [t for t in cands if _tiled_vmem_bytes(t) <= vmem_budget_bytes]
        lane_tile = max(fits) if fits else min(cands)

    if lane_tile is not None:
        if N % lane_tile or lane_tile % 128:
            raise ValueError("lane_tile must be a multiple of 128 that divides N")
        tn = int(lane_tile)
        nk = N // tn
        grid = (B, nk, 3)

        def _x_spec(j):
            # Lane-dense [C, tn] view of vector component j of window k of batch b.
            return pl.BlockSpec((None, C, tn),
                                lambda b, k, v, j=j: (b, 0, j * nk + k))

        in_specs = [
            _x_spec(0), _x_spec(1), _x_spec(2),
            pl.BlockSpec((C, C), lambda b, k, v: (0, 0)),       # resident weight
        ]
        out_specs = pl.BlockSpec((None, C, tn),
                                 lambda b, k, v: (b, 0, v * nk + k))
        scratch_shapes = [pltpu.VMEM((3, C, tn), jnp.float32)]
        dims = ("parallel", "parallel", "arbitrary")
        kernel = functools.partial(_vn_leaky_relu_kernel_tiled,
                                   negative_slope=float(negative_slope))
        args = (xf, xf, xf, w)
        est = _tiled_vmem_bytes(tn)
    else:
        grid = (B,)
        in_specs = [
            pl.BlockSpec((None, C, 3 * N), lambda b: (b, 0, 0)),
            pl.BlockSpec((C, C), lambda b: (0, 0)),
        ]
        out_specs = pl.BlockSpec((None, C, 3 * N), lambda b: (b, 0, 0))
        scratch_shapes = []
        dims = ("parallel",)
        kernel = functools.partial(_vn_leaky_relu_kernel_full,
                                   negative_slope=float(negative_slope))
        args = (xf, w)
        est = _untiled_vmem_bytes(N)

    # Raise the scoped-VMEM limit only when the estimate needs it (v5e default is
    # 16 MiB, v6e/v7x 32 MiB); capped so it stays legal on v7x (64 MiB physical).
    vmem_limit = None
    if est > (14 << 20):
        vmem_limit = int(min(max(2 * est, 32 << 20), 64 << 20))

    out = pl.pallas_call(
        kernel,
        out_shape=jax.ShapeDtypeStruct((B, C, 3 * N), x.dtype),
        grid=grid,
        in_specs=in_specs,
        out_specs=out_specs,
        scratch_shapes=scratch_shapes,
        compiler_params=pltpu.CompilerParams(
            dimension_semantics=dims, vmem_limit_bytes=vmem_limit),
    )(*args)
    return out.reshape(B, C, 3, N)


# ---------------------------------------------------------------------------
# Pure-JAX reference + tests
# ---------------------------------------------------------------------------
def vn_leaky_relu_ref(x, w, negative_slope=0.2):
    """Mirrors the PyTorch VNLeakyReLU forward."""
    d = jnp.einsum("oc,bcvn->bovn", w, x, precision=jax.lax.Precision.HIGHEST)
    dotprod = jnp.sum(x * d, axis=2, keepdims=True)
    mask = (dotprod >= 0).astype(x.dtype)
    d_norm_sq = jnp.sum(d * d, axis=2, keepdims=True)
    return negative_slope * x + (1 - negative_slope) * (
        mask * x + (1 - mask) * (x - dotprod / (d_norm_sq + EPS) * d)
    )


def _check_case(key, batch, channels, samples, lane_tile=None):
    kx, kw = jax.random.split(key)
    x = jax.random.normal(kx, (batch, channels, 3, samples), dtype=jnp.float32)
    bound = 1.0 / (channels ** 0.5)  # nn.Linear(C, C, bias=False) init range
    w = jax.random.uniform(kw, (channels, channels), dtype=jnp.float32,
                           minval=-bound, maxval=bound)

    out = jax.block_until_ready(vn_leaky_relu(x, w, lane_tile=lane_tile))
    ref = vn_leaky_relu_ref(x, w)

    assert out.shape == x.shape and out.dtype == x.dtype
    # Tolerance leaves headroom for MXU multi-pass f32 rounding vs the
    # HIGHEST-precision XLA reference matmul; observed error is ~1e-6.
    assert jnp.allclose(out, ref, rtol=5e-3, atol=5e-3), (
        "Pallas VNLeakyReLU mismatch "
        f"(max abs diff {jnp.max(jnp.abs(out - ref)):.3e})"
    )


if __name__ == "__main__":
    key = jax.random.PRNGKey(0)
    k_small, k_tiled = jax.random.split(key)

    # Small shape -> whole-batch fused-matmul path (grid over B only).
    _check_case(k_small, batch=2, channels=4, samples=16)

    # N a multiple of 128 with an explicit lane tile -> N-tiled path
    # (grid (B, N//tn, 3) with an "arbitrary" inner axis over the 3 planes).
    _check_case(k_tiled, batch=2, channels=8, samples=256, lane_tile=128)

    print("KERNEL_OK")
</pallas_src>

<mosaic_0001>
module attributes {stable_mosaic.version = 11 : i64} {
  func.func @_vn_leaky_relu_kernel_full(%arg0: i32, %arg1: memref<1x4x48xf32, #tpu.memory_space<vmem>>, %arg2: memref<4x4xf32, #tpu.memory_space<vmem>>, %arg3: memref<1x4x48xf32, #tpu.memory_space<vmem>>) attributes {dimension_semantics = [#tpu.dimension_semantics<parallel>], iteration_bounds = array<i64: 2>, scalar_prefetch = 0 : i64, scratch_operands = 0 : i64, tpu.core_type = #tpu.core_type<tc>, window_params = [{transform_indices = @transform_0, window_bounds = array<i64: 1, 4, 48>}, {pipeline_mode = #tpu.pipeline_mode<synchronous>, transform_indices = @transform_1, window_bounds = array<i64: 4, 4>}, {transform_indices = @transform_2, window_bounds = array<i64: 1, 4, 48>}]} {
    %c0 = arith.constant 0 : index
    %c0_0 = arith.constant 0 : index
    %0 = vector.load %arg2[%c0, %c0_0] : memref<4x4xf32, #tpu.memory_space<vmem>>, vector<4x4xf32>
    %c0_1 = arith.constant 0 : index
    %c0_2 = arith.constant 0 : index
    %c0_3 = arith.constant 0 : index
    %1 = vector.load %arg1[%c0_1, %c0_2, %c0_3] : memref<1x4x48xf32, #tpu.memory_space<vmem>>, vector<1x4x48xf32>
    %2 = vector.shape_cast %1 : vector<1x4x48xf32> to vector<4x48xf32>
    %cst = arith.constant dense<0.000000e+00> : vector<4x48xf32>
    %3 = tpu.matmul %0, %2, %cst {dimension_numbers = #tpu.dot_dimension_numbers<[1], [0], [0], [1], [0, 0, 1, 1], [], []>} : vector<4x4xf32>, vector<4x48xf32>, vector<4x48xf32> -> vector<4x48xf32>
    %cst_4 = arith.constant 0.000000e+00 : f32
    %4 = vector.broadcast %cst_4 : f32 to vector<4x16xf32>
    %cst_5 = arith.constant 0.000000e+00 : f32
    %5 = vector.broadcast %cst_5 : f32 to vector<4x16xf32>
    %c0_6 = arith.constant 0 : index
    %c0_7 = arith.constant 0 : index
    %c0_8 = arith.constant 0 : index
    %6 = vector.load %arg1[%c0_6, %c0_7, %c0_8] : memref<1x4x48xf32, #tpu.memory_space<vmem>>, vector<1x4x16xf32>
    %7 = vector.shape_cast %6 : vector<1x4x16xf32> to vector<4x16xf32>
    %8 = vector.extract_strided_slice %3 {offsets = [0, 0], sizes = [4, 16], strides = [1, 1]} : vector<4x48xf32> to vector<4x16xf32>
    %9 = arith.mulf %7, %8 : vector<4x16xf32>
    %10 = arith.addf %4, %9 : vector<4x16xf32>
    %11 = arith.mulf %8, %8 : vector<4x16xf32>
    %12 = arith.addf %5, %11 : vector<4x16xf32>
    %c0_9 = arith.constant 0 : index
    %c0_10 = arith.constant 0 : index
    %c16 = arith.constant 16 : index
    %13 = vector.load %arg1[%c0_9, %c0_10, %c16] : memref<1x4x48xf32, #tpu.memory_space<vmem>>, vector<1x4x16xf32>
    %14 = vector.shape_cast %13 : vector<1x4x16xf32> to vector<4x16xf32>
    %15 = vector.extract_strided_slice %3 {offsets = [0, 16], sizes = [4, 16], strides = [1, 1]} : vector<4x48xf32> to vector<4x16xf32>
    %16 = arith.mulf %14, %15 : vector<4x16xf32>
    %17 = arith.addf %10, %16 : vector<4x16xf32>
    %18 = arith.mulf %15, %15 : vector<4x16xf32>
    %19 = arith.addf %12, %18 : vector<4x16xf32>
    %c0_11 = arith.constant 0 : index
    %c0_12 = arith.constant 0 : index
    %c32 = arith.constant 32 : index
    %20 = vector.load %arg1[%c0_11, %c0_12, %c32] : memref<1x4x48xf32, #tpu.memory_space<vmem>>, vector<1x4x16xf32>
    %21 = vector.shape_cast %20 : vector<1x4x16xf32> to vector<4x16xf32>
    %22 = vector.extract_strided_slice %3 {offsets = [0, 32], sizes = [4, 16], strides = [1, 1]} : vector<4x48xf32> to vector<4x16xf32>
    %23 = arith.mulf %21, %22 : vector<4x16xf32>
    %24 = arith.addf %17, %23 : vector<4x16xf32>
    %25 = arith.mulf %22, %22 : vector<4x16xf32>
    %26 = arith.addf %19, %25 : vector<4x16xf32>
    %cst_13 = arith.constant 0.000000e+00 : f32
    %27 = vector.broadcast %cst_13 : f32 to vector<4x16xf32>
    %28 = arith.cmpf olt, %24, %27 : vector<4x16xf32>
    %cst_14 = arith.constant 9.99999997E-7 : f32
    %29 = vector.broadcast %cst_14 : f32 to vector<4x16xf32>
    %30 = arith.addf %26, %29 : vector<4x16xf32>
    %31 = arith.divf %24, %30 : vector<4x16xf32>
    %cst_15 = arith.constant 0.000000e+00 : f32
    %32 = vector.broadcast %cst_15 : f32 to vector<4x16xf32>
    %33 = arith.select %28, %31, %32 : vector<4x16xi1>, vector<4x16xf32>
    %cst_16 = arith.constant 8.000000e-01 : f32
    %34 = vector.broadcast %cst_16 : f32 to vector<4x16xf32>
    %35 = arith.mulf %34, %33 : vector<4x16xf32>
    %c0_17 = arith.constant 0 : index
    %c0_18 = arith.constant 0 : index
    %c0_19 = arith.constant 0 : index
    %36 = vector.load %arg1[%c0_17, %c0_18, %c0_19] : memref<1x4x48xf32, #tpu.memory_space<vmem>>, vector<1x4x16xf32>
    %37 = vector.shape_cast %36 : vector<1x4x16xf32> to vector<4x16xf32>
    %38 = vector.extract_strided_slice %3 {offsets = [0, 0], sizes = [4, 16], strides = [1, 1]} : vector<4x48xf32> to vector<4x16xf32>
    %39 = arith.mulf %35, %38 : vector<4x16xf32>
    %40 = arith.subf %37, %39 : vector<4x16xf32>
    %c0_20 = arith.constant 0 : index
    %c0_21 = arith.constant 0 : index
    %c0_22 = arith.constant 0 : index
    %41 = vector.load %arg3[%c0_20, %c0_21, %c0_22] : memref<1x4x48xf32, #tpu.memory_space<vmem>>, vector<1x4x16xf32>
    %42 = vector.shape_cast %41 : vector<1x4x16xf32> to vector<4x16xf32>
    %43 = vector.shape_cast %40 : vector<4x16xf32> to vector<1x4x16xf32>
    tpu.vector_store %arg3[%c0_20, %c0_21, %c0_22], %43 {strides = array<i32>} : memref<1x4x48xf32, #tpu.memory_space<vmem>>, vector<1x4x16xf32>,
    %c0_23 = arith.constant 0 : index
    %c0_24 = arith.constant 0 : index
    %c16_25 = arith.constant 16 : index
    %44 = vector.load %arg1[%c0_23, %c0_24, %c16_25] : memref<1x4x48xf32, #tpu.memory_space<vmem>>, vector<1x4x16xf32>
    %45 = vector.shape_cast %44 : vector<1x4x16xf32> to vector<4x16xf32>
    %46 = vector.extract_strided_slice %3 {offsets = [0, 16], sizes = [4, 16], strides = [1, 1]} : vector<4x48xf32> to vector<4x16xf32>
    %47 = arith.mulf %35, %46 : vector<4x16xf32>
    %48 = arith.subf %45, %47 : vector<4x16xf32>
    %c0_26 = arith.constant 0 : index
    %c0_27 = arith.constant 0 : index
    %c16_28 = arith.constant 16 : index
    %49 = vector.load %arg3[%c0_26, %c0_27, %c16_28] : memref<1x4x48xf32, #tpu.memory_space<vmem>>, vector<1x4x16xf32>
    %50 = vector.shape_cast %49 : vector<1x4x16xf32> to vector<4x16xf32>
    %51 = vector.shape_cast %48 : vector<4x16xf32> to vector<1x4x16xf32>
    tpu.vector_store %arg3[%c0_26, %c0_27, %c16_28], %51 {strides = array<i32>} : memref<1x4x48xf32, #tpu.memory_space<vmem>>, vector<1x4x16xf32>,
    %c0_29 = arith.constant 0 : index
    %c0_30 = arith.constant 0 : index
    %c32_31 = arith.constant 32 : index
    %52 = vector.load %arg1[%c0_29, %c0_30, %c32_31] : memref<1x4x48xf32, #tpu.memory_space<vmem>>, vector<1x4x16xf32>
    %53 = vector.shape_cast %52 : vector<1x4x16xf32> to vector<4x16xf32>
    %54 = vector.extract_strided_slice %3 {offsets = [0, 32], sizes = [4, 16], strides = [1, 1]} : vector<4x48xf32> to vector<4x16xf32>
    %55 = arith.mulf %35, %54 : vector<4x16xf32>
    %56 = arith.subf %53, %55 : vector<4x16xf32>
    %c0_32 = arith.constant 0 : index
    %c0_33 = arith.constant 0 : index
    %c32_34 = arith.constant 32 : index
    %57 = vector.load %arg3[%c0_32, %c0_33, %c32_34] : memref<1x4x48xf32, #tpu.memory_space<vmem>>, vector<1x4x16xf32>
    %58 = vector.shape_cast %57 : vector<1x4x16xf32> to vector<4x16xf32>
    %59 = vector.shape_cast %56 : vector<4x16xf32> to vector<1x4x16xf32>
    tpu.vector_store %arg3[%c0_32, %c0_33, %c32_34], %59 {strides = array<i32>} : memref<1x4x48xf32, #tpu.memory_space<vmem>>, vector<1x4x16xf32>,
    return
  }
  func.func @transform_0(%arg0: i32) -> (i32, i32, i32) {
    %c0_i32 = arith.constant 0 : i32
    %c0_i32_0 = arith.constant 0 : i32
    %c0_i32_1 = arith.constant 0 : i32
    return %arg0, %c0_i32, %c0_i32_0 : i32, i32, i32
  }
  func.func @transform_1(%arg0: i32) -> (i32, i32) {
    %c0_i32 = arith.constant 0 : i32
    %c0_i32_0 = arith.constant 0 : i32
    %c0_i32_1 = arith.constant 0 : i32
    return %c0_i32, %c0_i32_0 : i32, i32
  }
  func.func @transform_2(%arg0: i32) -> (i32, i32, i32) {
    %c0_i32 = arith.constant 0 : i32
    %c0_i32_0 = arith.constant 0 : i32
    %c0_i32_1 = arith.constant 0 : i32
    return %arg0, %c0_i32, %c0_i32_0 : i32, i32, i32
  }
}

</mosaic_0001>

<bundles_post_ra>
// kernel: tpu_custom_call.1
= control target key start
LH: loop header
LB: loop body
LE: loop exit
PB: predicated region body
PF: predicated region fallthrough
CT: control target
= control target key end

     0   :  { %7 = vsyncpa [#allocation3], 0  ;;  %s855_s0 = inlined_call_operand.hbm [shape: f32[2,4,48], index: 0, kind: input, shape index: {}]   ;;  %s856_s1 = inlined_call_operand.hbm [shape: f32[4,4], index: 1, kind: input, shape index: {}]   ;;  %s857_s2 = inlined_call_operand.hbm [shape: f32[2,4,48], index: 2, kind: output, shape index: {}]  }
   0x1   :  { %9 = vsyncpa [#allocation3 + $0x1], 0 }
   0x2   :  { %10 = vsyncpa [#allocation6], 0 }
   0x3   :  { %11 = vsyncpa [#allocation4], 0 }
   0x4   :  { %13 = vsyncpa [#allocation4 + $0x1], 0  ;;  %s645_s9 = smov 0   ;;  %s647_s10 = smov 0  }
   0x5   :  { %s649_s11 = smov 0   ;;  %s651_s12 = smov 0  }
   0x6 LB: > { %s666_s13 = sadd.s32 4294967295, %s619_s12   ;;  %s403_s14 = sadd.s32 4294967294, %s619_s12   ;;  %s619_s12 = sphi %s651_s12, %s881_s12   ;;  %s615_s11 = sphi %s649_s11, %s880_s11   ;;  %s611_s10 = sphi %s647_s10, %s879_s10   ;;  %s607_s9 = sphi %s645_s9, %s878_s9  }
   0x7   : > { %p39_p0 = scmp.ne.s32.totalorder %s611_s10, %s607_s9  ;;  %p858_p1 = scmp.eq.s32.totalorder %s666_s13, 0 }
   0x8   : > { %p90_p3 = scmp.eq.s32.totalorder %s403_s14, 1  ;;  %p404_p5 = scmp.ge.s32.totalorder %s619_s12, 1 }
   0x9   : > { %p675_p4 = por %p858_p1, %p39_p0  ;;  %p97_p7 = scmp.lt.s32.totalorder %s619_s12, 3 }
   0xa   : > { %p680_p6 = por %p90_p3, %p39_p0  ;;  %s621_s18 = smov [#allocation5]  }
   0xb   : > { %s861_s15 = scalar_select %p675_p4, 1, 0 }
   0xc   : > { %s862_s16 = scalar_select %p680_p6, 1, 0 }
   0xd   : > { %p685_p8 = pnand %p404_p5, %p97_p7  ;;  %s110_s19 = sshll.u32 %s621_s18, 4  ;;  %s111_s19 = int_to_ptr.vmem [resolvable:$true] %s110_s19 }
   0xe   : > { %s693_s20 = sadd.s32 1, %s619_s12   ;;  %s26_s24 = sadd.s32 1, %s615_s11 }
   0xf   : > { %s863_s17 = scalar_select %p685_p8, 1, 0 }
  0x10   : > { %p434_p10 = pneg %p685_p8  ;;  %s23_s22 = ssub.s32 %s619_s12, %s693_s20 }
  0x11   : > { %p703_p12 = scmp.eq.s32.totalorder %s23_s22, 0  ;;  %s491_s27 = scalar_lea.hbm %s856_s1, 64 }
  0x12   : > { %p697_p11 = pnand %p434_p10, %p858_p1  ;;  %p492_p0 = scmp.ne.s32.totalorder %s856_s1, %s491_s27 }
  0x13   : > { %s865_s23 = scalar_select %p703_p12, 1, 0 }
  0x14   : > { %p493_p3 = pneg %p697_p11  ;;  %p498_p10 = scmp.lt.u32.totalorder %s491_s27, %s856_s1 }
  0x16   : > { %p494_p5 = pnand %p493_p3, %p492_p0 }
  0x18   : > { %p495_p7 = pneg %p494_p5 }
  0x1a   : > { %p500_p9 = pnand %p498_p10, %p495_p7 }
  0x1c   : > { %503 = shalt.err (!%p500_p9)
}
  0x1d   : > { %s504_s4 = scalar_lea.vmem %s111_s19, 64  ;;  %p512_p6 = scmp.lt.s32.totalorder %s111_s19, %s111_s19 }
  0x1e   : > { %p505_p1 = scmp.ne.s32.totalorder %s111_s19, %s504_s4  ;;  %p513_p4 = scmp.lt.s32.totalorder %s504_s4, %s504_s4 }
  0x20   : > { %p507_p2 = pnand %p505_p1, %p493_p3  ;;  %p514_p8 = por %p513_p4, %p512_p6 }
  0x22   : > { %p508_p13 = pneg %p507_p2 }
  0x24   : > { %p515_p12 = pnand %p514_p8, %p508_p13 }
  0x26   : > { %518 = shalt.err (!%p515_p12)
}
  0x27   : > { %437 = dma.hbm_to_vmem [thread:$0]  (!%p697_p11), %s856_s1, 64, %s111_s19, [#allocation6]  }
  0x28   : > { %p866_p1 = scmp.ne.s32.totalorder %s865_s23, 0  ;;  %p34_p2 = scmp.eq.s32.totalorder %s619_s12, 0 }
  0x29   : > { %p867_p4 = scmp.ne.s32.totalorder %s615_s11, %s611_s10  ;;  %p868_p6 = scmp.eq.s32.totalorder %s666_s13, 1 }
  0x2a   : > { %s729_s7 = scalar_select %p866_p1, %s615_s11, %s26_s24  }
  0x2b   : > { %p737_p8 = por %p868_p6, %p867_p4  ;;  %p447_p9 = scmp.lt.s32.totalorder %s619_s12, 2 }
  0x2c   : > { %s121_s14 = sand.u32 1, %s615_s11   ;;  %p870_p12 = pmov %p867_p4 }
  0x2d   : > { %s407_s18 = sshll.u32 %s121_s14, 2  ;;  %s408_s21 = sshll.u32 %s619_s12, 6 }
  0x2e   : > { %p35_p13 = por %p34_p2, %p870_p12  ;;  %s750_s19 = scalar_lea.hbm %s855_s0, %s408_s21 }
  0x2f   : > { %s125_s23 = scalar_lea.vmem [#allocation2], %s407_s18  ;;  %s122_s27 = scalar_lea.sflag [#allocation3], %s121_s14 }
  0x30   : > { %s132_s24 = sshll.u32 %s125_s23, 4  ;;  %p752_p11 = pnand %p447_p9, %p35_p13  ;;  %s756_s24 = int_to_ptr.vmem [resolvable:$true] %s132_s24 }
  0x31   : > { %s519_s28 = scalar_lea.hbm %s750_s19, 64  ;;  %s524_s3 = scalar_lea.hbm %s855_s0, 128 }
  0x32   : > { %p520_p0 = scmp.ne.s32.totalorder %s750_s19, %s519_s28  ;;  %p521_p3 = pneg %p752_p11 }
  0x33   : > { %p525_p10 = scmp.lt.u32.totalorder %s750_s19, %s855_s0  ;;  %p526_p1 = scmp.lt.u32.totalorder %s524_s3, %s519_s28 }
  0x34   : > { %p522_p5 = pnand %p521_p3, %p520_p0  ;;  %p528_p4 = scmp.lt.u32.totalorder %s519_s28, %s750_s19 }
  0x35   : > { %p527_p2 = por %p526_p1, %p525_p10 }
  0x36   : > { %p523_p7 = pneg %p522_p5 }
  0x37   : > { %p529_p6 = por %p528_p4, %p527_p2 }
  0x39   : > { %p530_p9 = pnand %p529_p6, %p523_p7 }
  0x3b   : > { %533 = shalt.err (!%p530_p9)
}
  0x3c   : > { %s534_s6 = scalar_lea.vmem %s756_s24, 64  ;;  %s622_s14 = smov [#allocation2]  }
  0x3d   : > { %p535_p12 = scmp.ne.s32.totalorder %s756_s24, %s534_s6  ;;  %s539_s18 = sshll.u32 %s622_s14, 4  ;;  %s540_s18 = int_to_ptr.vmem [resolvable:$false] %s539_s18 }
  0x3e   : > { %s541_s21 = scalar_lea.vmem %s540_s18, 128  ;;  %p542_p5 = scmp.lt.s32.totalorder %s756_s24, %s540_s18 }
  0x3f   : > { %p537_p13 = pnand %p535_p12, %p521_p3  ;;  %p543_p10 = scmp.lt.s32.totalorder %s541_s21, %s534_s6 }
  0x41   : > { %p538_p0 = pneg %p537_p13  ;;  %p544_p1 = por %p543_p10, %p542_p5 }
  0x43   : > { %p545_p2 = pnand %p544_p1, %p538_p0 }
  0x45   : > { %548 = shalt.err (!%p545_p2)
}
  0x46   : > { %441 = dma.hbm_to_vmem [thread:$0]  (!%p752_p11), %s750_s19, 64, %s756_s24, %s122_s27  }
  0x47   : > { %p872_p7 = scmp.ne.s32.totalorder %s863_s17, 0 }
  0x48   : > { %s786_s22 = sand.u32 (!%p872_p7), 1, %s611_s10   ;;  %p873_p3 = scmp.ne.s32.totalorder (!%p872_p7), %s861_s15, 0 }
  0x49   : > { %141 = sbr.rel (%p872_p7) target bundleno = 574 (0x23e), region = 28  ;;  %s410_s25 = sshll.u32 (!%p872_p7), %s786_s22, 2 }
  0x4a   : > { %s144_s23 = scalar_lea.sflag (!%p872_p7), [#allocation3], %s786_s22  ;;  %s792_s28 = scalar_lea.vmem (!%p872_p7), [#allocation2], %s410_s25 }
  0x50   : > { %594 = dma.done.wait (%p873_p3), %s144_s23, 64  }
  0x51   : > { %596 = vsyncadd (%p873_p3), %s144_s23, 4294967232  ;;  %p874_p11 = scmp.eq.s32.totalorder %s666_s13, 0 }
  0x53   : > { %598 = dma.done.wait (%p874_p11), [#allocation6], 64   ;;  %p875_p4 = pmov %p874_p11 }
  0x54   : > { %v623_v0 = vmov 0.0   ;;  %vm624_vm0 = vmmov 0   ;;  %vm178_vm1 = vcmask 1043456   ;;  %vm174_vm2 = vcmask 31744   ;;  %v173_v1 = vld [vmem:[%s792_s28] sm:$0xf] }
  0x55   : > { %600 = vsyncadd (%p875_p4), [#allocation6], 4294967232  ;;  %421 = vmatprep.subr.mxu0 %v623_v0  ;;  %423 = vmatprep.mubr.msk.f32.mxu0 %vm624_vm0, %v623_v0  ;;  %v172_v2 = vld [vmem:[#allocation5] sm:$0xf]  ;;  %s625_s15 = smov 112   ;;  %s626_s17 = smov 96  }
  0x56   : > { %422 = vmatpush3.msk.msra.mxu0 %vm178_vm1, %v173_v1  ;;  %vm282_vm4 = vcmask 125952   ;;  %s627_s19 = smov 16   ;;  %s628_s24 = smov 32   ;;  %v284_v26 = vld [vmem:[%s792_s28] sm:$0xf]  ;;  %vm295_vm5 = vcmask 257152  }
  0x57   : > { %424 = vmatmul.mubr.msk.f32.vlgmr.msra.gmra.mrb[0].mxu0 %vm174_vm2, %v172_v2  ;;  %s171_s26 = scalar_lea.vmem [#allocation7], %s410_s25  ;;  %v297_v27 = vld [vmem:[%s792_s28] sm:$0xf]  ;;  %s416_s27 = sshll.u32 %s666_s13, 6  ;;  %vm307_vm6 = vcmask 388352  }
  0x58   : > { %s323_s29 = sshll.u32 %s171_s26, 4  ;;  %s811_s4 = scalar_lea.hbm %s857_s2, %s416_s27  ;;  %s813_s29 = int_to_ptr.vmem [resolvable:$true] %s323_s29 }
  0x59   : > { %s310_s13 = scalar_lea.sflag [#allocation4], %s786_s22  ;;  %s549_s5 = scalar_lea.vmem %s813_s29, 64 }
  0x5a   : > { %p550_p6 = scmp.ne.s32.totalorder %s813_s29, %s549_s5  ;;  %s629_s6 = smov [#allocation7]  }
  0x5b   : > { %s553_s14 = sshll.u32 %s629_s6, 4  ;;  %s554_s14 = int_to_ptr.vmem [resolvable:$false] %s553_s14 }
  0x5c   : > { %p551_p9 = pnand %p550_p6, %p737_p8  ;;  %s555_s18 = scalar_lea.vmem %s554_s14, 128 }
  0x5d   : > { %p556_p13 = scmp.lt.s32.totalorder %s813_s29, %s554_s14  ;;  %p557_p0 = scmp.lt.s32.totalorder %s555_s18, %s549_s5 }
  0x5e   : > { %p552_p12 = pneg %p551_p9 }
  0x5f   : > { %p558_p5 = por %p557_p0, %p556_p13 }
  0x61   : > { %p559_p10 = pnand %p558_p5, %p552_p12 }
 0x12a   : > { %v248_v3 = vpop.f32.mrb[0].mxu0 }
 0x12b   : > { %v425_v4 = vpop.f32.mrb[1].mxu0  ;;  %v254_v5 = vmul.f32 %v248_v3, %v248_v3  ;;  %v252_v6 = vmul.f32 %v248_v3, %v173_v1 }
 0x12d   : > { %262 = vrot.lane.b32.xlu0 %v254_v5, %s625_s15  ;;  %257 = vrot.lane.b32.xlu1 %v252_v6, %s625_s15 }
 0x131   : > { %270 = vrot.lane.b32.xlu0 %v254_v5, %s626_s17  ;;  %266 = vrot.lane.b32.xlu1 %v252_v6, %s626_s17 }
 0x135   : > { %286 = vrot.lane.b32.xlu0 %v248_v3, %s625_s15  ;;  %298 = vrot.lane.b32.xlu1 %v248_v3, %s626_s17 }
 0x19f   : > { %v263_v7 = vpop.permute.xlu0 %262  ;;  %v258_v12 = vpop.permute.xlu1 %257 }
 0x1a0   : > { %v265_v8 = vadd.f32 %v263_v7, %v254_v5  ;;  %v260_v14 = vadd.f32 %v258_v12, %v252_v6 }
 0x1a3   : > { %v271_v9 = vpop.permute.xlu0 %270  ;;  %v267_v13 = vpop.permute.xlu1 %266 }
 0x1a4   : > { %v273_v10 = vadd.f32 %v271_v9, %v265_v8  ;;  %v269_v15 = vadd.f32 %v267_v13, %v260_v14 }
 0x1a6   : > { %v275_v11 = vadd.f32 1e-06, %v273_v10  ;;  %vm274_vm3 = vcmp.lt.f32.partialorder %v269_v15, 0.0 }
 0x1a7   : > { %v287_v20 = vpop.permute.xlu0 %286  ;;  %v299_v21 = vpop.permute.xlu1 %298 }
 0x1a8   : > { %489 = vrcp.f32 %v275_v11 }
 0x1b2   : > { %v490_v16 = vpop.eup %489 }
 0x1b3   : > { %v277_v17 = vmul.f32 %v490_v16, %v269_v15 }
 0x1b5   : > { %v278_v18 = vsel %vm274_vm3, %v277_v17, 0.0 }
 0x1b6   : > { %v279_v19 = vmul.f32 0.8, %v278_v18 }
 0x1b8   : > { %v280_v22 = vmul.f32 %v279_v19, %v248_v3  ;;  %v289_v23 = vmul.f32 %v287_v20, %v279_v19  ;;  %v301_v24 = vmul.f32 %v299_v21, %v279_v19 }
 0x1ba   : > { %v281_v25 = vsub.f32 %v173_v1, %v280_v22  ;;  %291 = vrot.lane.b32.xlu0 %v289_v23, %s627_s19  ;;  %303 = vrot.lane.b32.xlu1 %v301_v24, %s628_s24 }
 0x1bc   : > { %283 = vst.msk [vmem:[%s171_s26] sm:$0xf] %vm282_vm4, %v281_v25 }
 0x22c   : > { %v292_v28 = vpop.permute.xlu0 %291  ;;  %v304_v29 = vpop.permute.xlu1 %303 }
 0x22d   : > { %v294_v30 = vsub.f32 %v284_v26, %v292_v28  ;;  %v306_v31 = vsub.f32 %v297_v27, %v304_v29 }
 0x22f   : > { %296 = vst.msk [vmem:[%s171_s26] sm:$0xf] %vm295_vm5, %v294_v30 }
 0x230   : > { %308 = vst.msk [vmem:[%s171_s26] sm:$0xf] %vm307_vm6, %v306_v31 }
 0x231   : > { %562 = shalt.err (!%p559_p10)
}
 0x232   : > { %s563_s21 = scalar_lea.hbm %s811_s4, 64  ;;  %s567_s23 = scalar_lea.hbm %s857_s2, 128 }
 0x233   : > { %p564_p1 = scmp.ne.s32.totalorder %s811_s4, %s563_s21  ;;  %p568_p3 = scmp.lt.u32.totalorder %s811_s4, %s857_s2 }
 0x234   : > { %p569_p11 = scmp.lt.u32.totalorder %s567_s23, %s563_s21  ;;  %p571_p6 = scmp.lt.u32.totalorder %s563_s21, %s811_s4 }
 0x235   : > { %p565_p2 = pnand %p564_p1, %p737_p8 }
 0x236   : > { %p570_p4 = por %p569_p11, %p568_p3 }
 0x237   : > { %p566_p7 = pneg %p565_p2 }
 0x238   : > { %p572_p9 = por %p571_p6, %p570_p4 }
 0x23a   : > { %p573_p12 = pnand %p572_p9, %p566_p7 }
 0x23c   : > { %576 = shalt.err (!%p573_p12)
}
 0x23d   : > { %432 = dma.vmem_to_hbm [thread:$0]  (%p737_p8), %s813_s29, 64, %s811_s4, %s310_s13  }
 0x23e PF: > { %s335_s17 = sand.u32 1, %s607_s9   ;;  %p876_p13 = scmp.ne.s32.totalorder %s862_s16, 0 }
 0x23f   : > { %p877_p0 = scmp.ge.s32.totalorder %s619_s12, 2  ;;  %s336_s19 = scalar_lea.sflag [#allocation4], %s335_s17 }
 0x241   : > { %p443_p5 = pnand %p877_p0, %p876_p13 }
 0x243   : > { %602 = dma.done.wait (!%p443_p5), %s336_s19, 64  }
 0x244   : > { %604 = vsyncadd (!%p443_p5), %s336_s19, 4294967232  ;;  %p16_p10 = scmp.ge.s32.totalorder %s693_s20, 4   ;;  %s878_s9 = smov %s611_s10 }
 0x245   : > { %s879_s10 = smov %s615_s11  ;;  %s880_s11 = smov %s729_s7 }
 0x246   : > { %s881_s12 = smov %s693_s20  ;;  %18 = sbr.rel (!%p16_p10) target bundleno = 6 (0x6), region = 77 }
 0x24d   :  { %341 = vsyncpa [#allocation3], 1 }
 0x24e   :  { %343 = vsyncpa [#allocation3 + $0x1], 1 }
 0x24f   :  { %344 = vsyncpa [#allocation6], 1 }
 0x250   :  { %345 = vsyncpa [#allocation4], 1 }
 0x251   :  { %347 = vsyncpa [#allocation4 + $0x1], 1 }

</bundles_post_ra>
